<compile_context>
chip_gen: v5e
topology: v5e:2x2
jax: 0.10.0
libtpu: 0.0.40
codegen_flags: <defaults>
</compile_context>

<pallas_src>
import functools

import jax
import jax.numpy as jnp
from jax.experimental import pallas as pl
from jax.experimental.pallas import tpu as pltpu

_LANE = 128
_SUBLANE = 8
_MAX_BATCH_TILE = 512  # sized for v7x's 64 MiB VMEM; v5e/v6e have extra headroom


def _round_up(n, m):
    return ((n + m - 1) // m) * m


def _mlp_kernel(x_ref, *refs, num_layers):
    """Fused Linear(+ReLU) stack.

    refs = (w1, b1, w2, b2, ..., out).  Weights are bf16 and VMEM-resident;
    matmuls accumulate f32 on the MXU; bias add / ReLU run in f32; one cast on
    the final lane-dense store.
    """
    o_ref = refs[-1]
    h = x_ref[...]                      # activations already in compute dtype
    for layer in range(num_layers):     # static unroll (<= 3 layers)
        w_ref = refs[2 * layer]
        b_ref = refs[2 * layer + 1]
        h = jnp.dot(h.astype(w_ref.dtype), w_ref[...],
                    preferred_element_type=jnp.float32)
        h = h + b_ref[...]              # f32 epilogue
        if layer < num_layers - 1:
            h = jnp.maximum(h, 0.0)
    o_ref[...] = h.astype(o_ref.dtype)


@functools.partial(jax.jit, static_argnames=("out_features", "compute_dtype"))
def _task_forward(x2, padded_params, *, out_features, compute_dtype):
    """pad -> fused-MLP pallas_call -> slice, all inside one jitted program.

    x2: (batch, in_features).  padded_params: tuple of (W_p, b_p) with every
    feature dim already padded to a multiple of 128 (W bf16, b f32).
    """
    batch, fin = x2.shape
    fin_p = padded_params[0][0].shape[0]
    fout_p = padded_params[-1][0].shape[1]
    num_layers = len(padded_params)
    out_dtype = x2.dtype

    # Batch tile: multiple of 8 (sublanes), capped for v7x VMEM; batch is
    # zero-padded up to a multiple of the tile and sliced afterwards.
    tb = min(_round_up(batch, _SUBLANE), _MAX_BATCH_TILE)
    batch_p = _round_up(batch, tb)

    # Pad + cast activations once outside the kernel: streaming bf16 halves
    # HBM traffic vs f32.
    x_p = jnp.pad(x2.astype(compute_dtype),
                  ((0, batch_p - batch), (0, fin_p - fin)))

    grid = (batch_p // tb,)

    in_specs = [pl.BlockSpec((tb, fin_p), lambda i: (i, 0))]
    args = [x_p]
    for wp, bp in padded_params:
        din_p, dout_p = wp.shape
        # Same block (0, 0) for every batch tile -> weights/biases stay
        # resident in VMEM; only activations are streamed per tile.
        in_specs.append(pl.BlockSpec((din_p, dout_p), lambda i: (0, 0)))
        in_specs.append(pl.BlockSpec((1, dout_p), lambda i: (0, 0)))
        args.extend([wp, bp])

    y_p = pl.pallas_call(
        functools.partial(_mlp_kernel, num_layers=num_layers),
        out_shape=jax.ShapeDtypeStruct((batch_p, fout_p), out_dtype),
        grid=grid,
        in_specs=in_specs,
        out_specs=pl.BlockSpec((tb, fout_p), lambda i: (i, 0)),
        compiler_params=pltpu.CompilerParams(
            dimension_semantics=("parallel",)),
    )(*args)

    return y_p[:batch, :out_features]


def _init_linear(key, fan_in, fan_out, dtype=jnp.float32):
    """PyTorch-style init U(-1/sqrt(fan_in), 1/sqrt(fan_in)); W stored (in, out)."""
    kw, kb = jax.random.split(key)
    bound = 1.0 / (fan_in ** 0.5)
    w = jax.random.uniform(kw, (fan_in, fan_out), dtype, minval=-bound, maxval=bound)
    b = jax.random.uniform(kb, (fan_out,), dtype, minval=-bound, maxval=bound)
    return w, b


class Task:
    """JAX/Pallas port of the PyTorch Task module (single fused kernel forward)."""

    def __init__(self, in_features, out_features, is_nonlinear=False, key=None,
                 compute_dtype=jnp.bfloat16):
        if key is None:
            key = jax.random.PRNGKey(0)
        self.in_features = in_features
        self.out_features = out_features
        self.is_nonlinear = is_nonlinear
        self.compute_dtype = compute_dtype

        if is_nonlinear:
            dims = [in_features, in_features // 2, in_features // 4, out_features]
        else:
            dims = [in_features, out_features]
        keys = jax.random.split(key, len(dims) - 1)
        # Unpadded f32 master params (torch-equivalent, W stored as (in, out)).
        self.params = [_init_linear(k, dims[i], dims[i + 1])
                       for i, k in enumerate(keys)]

        # Lane-dense padded copies used by the kernel: every feature dim is
        # rounded up to a multiple of 128.  Zero padding is inert: padded x
        # columns are zero, padded W rows/cols and biases are zero, ReLU(0)=0.
        self._dims_p = [_round_up(max(d, 1), _LANE) for d in dims]
        padded = []
        for (w, b), din_p, dout_p in zip(self.params,
                                         self._dims_p[:-1], self._dims_p[1:]):
            wp = jnp.pad(w, ((0, din_p - w.shape[0]), (0, dout_p - w.shape[1])))
            bp = jnp.pad(b, (0, dout_p - b.shape[0])).reshape(1, dout_p)
            # Weights in bf16 (MXU operands), biases kept f32 (f32 epilogue).
            padded.append((wp.astype(compute_dtype), bp.astype(jnp.float32)))
        self._padded = tuple(padded)

    def __call__(self, x):
        orig_shape = x.shape
        assert orig_shape[-1] == self.in_features
        x2 = x.reshape(-1, self.in_features)
        y = _task_forward(x2, self._padded,
                          out_features=self.out_features,
                          compute_dtype=self.compute_dtype)
        return y.reshape(orig_shape[:-1] + (self.out_features,))


def _reference(task, x):
    """Pure-JAX reference mirroring the kernel's bf16-operand / f32-accum math."""
    orig_shape = x.shape
    h = x.reshape(-1, orig_shape[-1])
    n = len(task.params)
    for i, (w, b) in enumerate(task.params):
        h = jnp.dot(h.astype(task.compute_dtype), w.astype(task.compute_dtype),
                    preferred_element_type=jnp.float32)
        h = h + b.astype(jnp.float32)
        if task.is_nonlinear and i < n - 1:
            h = jnp.maximum(h, 0.0)
    return h.astype(x.dtype).reshape(orig_shape[:-1] + (task.out_features,))


if __name__ == "__main__":
    key = jax.random.PRNGKey(0)
    kx, kx2, kp_lin, kp_nl = jax.random.split(key, 4)

    batch = 8
    in_features = 32
    out_features = 8

    x = jax.random.normal(kx, (batch, in_features), dtype=jnp.float32)

    # Linear variant
    task_lin = Task(in_features, out_features, is_nonlinear=False, key=kp_lin)
    y_lin = jax.block_until_ready(task_lin(x))
    assert y_lin.shape == (batch, out_features)
    assert jnp.allclose(y_lin, _reference(task_lin, x), atol=5e-3, rtol=5e-3)

    # Nonlinear (fused 3-layer MLP) variant
    task_nl = Task(in_features, out_features, is_nonlinear=True, key=kp_nl)
    y_nl = jax.block_until_ready(task_nl(x))
    assert y_nl.shape == (batch, out_features)
    assert jnp.allclose(y_nl, _reference(task_nl, x), atol=5e-3, rtol=5e-3)

    # Non-multiple-of-8 batch exercises the batch padding / slicing path.
    x2 = jax.random.normal(kx2, (20, in_features), dtype=jnp.float32)
    y2 = jax.block_until_ready(task_nl(x2))
    assert y2.shape == (20, out_features)
    assert jnp.allclose(y2, _reference(task_nl, x2), atol=5e-3, rtol=5e-3)

    print("KERNEL_OK")
</pallas_src>

<mosaic_0001>
module attributes {stable_mosaic.version = 11 : i64} {
  func.func @_mlp_kernel(%arg0: i32, %arg1: memref<8x128xbf16, #tpu.memory_space<vmem>>, %arg2: memref<128x128xbf16, #tpu.memory_space<vmem>>, %arg3: memref<1x128xf32, #tpu.memory_space<vmem>>, %arg4: memref<8x128xf32, #tpu.memory_space<vmem>>) attributes {dimension_semantics = [#tpu.dimension_semantics<parallel>], iteration_bounds = array<i64: 1>, scalar_prefetch = 0 : i64, scratch_operands = 0 : i64, tpu.core_type = #tpu.core_type<tc>, window_params = [{transform_indices = @transform_0, window_bounds = array<i64: 8, 128>}, {pipeline_mode = #tpu.pipeline_mode<synchronous>, transform_indices = @transform_1, window_bounds = array<i64: 128, 128>}, {pipeline_mode = #tpu.pipeline_mode<synchronous>, transform_indices = @transform_2, window_bounds = array<i64: 1, 128>}, {transform_indices = @transform_3, window_bounds = array<i64: 8, 128>}]} {
    %c0 = arith.constant 0 : index
    %c0_0 = arith.constant 0 : index
    %0 = vector.load %arg1[%c0, %c0_0] : memref<8x128xbf16, #tpu.memory_space<vmem>>, vector<8x128xbf16>
    %c0_1 = arith.constant 0 : index
    %c0_2 = arith.constant 0 : index
    %1 = vector.load %arg2[%c0_1, %c0_2] : memref<128x128xbf16, #tpu.memory_space<vmem>>, vector<128x128xbf16>
    %cst = arith.constant dense<0.000000e+00> : vector<8x128xf32>
    %2 = tpu.matmul %0, %1, %cst {dimension_numbers = #tpu.dot_dimension_numbers<[1], [0], [0], [1], [0, 0, 1, 1], [], []>} : vector<8x128xbf16>, vector<128x128xbf16>, vector<8x128xf32> -> vector<8x128xf32>
    %c0_3 = arith.constant 0 : index
    %c0_4 = arith.constant 0 : index
    %3 = vector.load %arg3[%c0_3, %c0_4] : memref<1x128xf32, #tpu.memory_space<vmem>>, vector<1x128xf32>
    %4 = vector.broadcast %3 : vector<1x128xf32> to vector<8x128xf32>
    %5 = arith.addf %2, %4 : vector<8x128xf32>
    %c0_5 = arith.constant 0 : index
    %c0_6 = arith.constant 0 : index
    %6 = vector.load %arg4[%c0_5, %c0_6] : memref<8x128xf32, #tpu.memory_space<vmem>>, vector<8x128xf32>
    tpu.vector_store %arg4[%c0_5, %c0_6], %5 {strides = array<i32>} : memref<8x128xf32, #tpu.memory_space<vmem>>, vector<8x128xf32>,
    return
  }
  func.func @transform_0(%arg0: i32) -> (i32, i32) {
    %c0_i32 = arith.constant 0 : i32
    %c0_i32_0 = arith.constant 0 : i32
    return %arg0, %c0_i32 : i32, i32
  }
  func.func @transform_1(%arg0: i32) -> (i32, i32) {
    %c0_i32 = arith.constant 0 : i32
    %c0_i32_0 = arith.constant 0 : i32
    %c0_i32_1 = arith.constant 0 : i32
    return %c0_i32, %c0_i32_0 : i32, i32
  }
  func.func @transform_2(%arg0: i32) -> (i32, i32) {
    %c0_i32 = arith.constant 0 : i32
    %c0_i32_0 = arith.constant 0 : i32
    %c0_i32_1 = arith.constant 0 : i32
    return %c0_i32, %c0_i32_0 : i32, i32
  }
  func.func @transform_3(%arg0: i32) -> (i32, i32) {
    %c0_i32 = arith.constant 0 : i32
    %c0_i32_0 = arith.constant 0 : i32
    return %arg0, %c0_i32 : i32, i32
  }
}

</mosaic_0001>

<bundles_post_ra>
// kernel: _task_forward.1
= control target key start
LH: loop header
LB: loop body
LE: loop exit
PB: predicated region body
PF: predicated region fallthrough
CT: control target
= control target key end

     0   :  { %8 = vsyncpa [#allocation3], 0  ;;  %s264_s0 = inlined_call_operand.vmem [shape: bf16[8,128], index: 0, kind: input, shape index: {}]   ;;  %s265_s1 = inlined_call_operand.hbm [shape: bf16[128,128], index: 1, kind: input, shape index: {}]   ;;  %s266_s2 = inlined_call_operand.vmem [shape: f32[1,128], index: 2, kind: input, shape index: {}]   ;;  %s267_s3 = inlined_call_operand.hbm [shape: f32[8,128], index: 3, kind: output, shape index: {}]  }
   0x1   :  { %9 = vsyncpa [#allocation4], 0  ;;  %s16_s14 = sshll.u32 %s265_s1, 4  ;;  %s228_s15 = smov [#allocation2]   ;;  %s17_s14 = int_to_ptr.hbm [resolvable:$true] %s16_s14 }
   0x2   :  { %s18_s16 = sshll.u32 %s228_s15, 4  ;;  %s229_s17 = smov 64   ;;  %s19_s16 = int_to_ptr.vmem [resolvable:$true] %s18_s16 }
   0x3   :  { %s230_s18 = smov 4  }
   0x4   :  { %24 = dma.hbm_to_vmem [thread:$0]  %s17_s14, 1024, %s19_s16, [#allocation3], %s229_s17, %s229_s17, %s230_s18  }
   0x5   :  { %224 = dma.done.wait [#allocation3], 1024  }
   0x6   :  { %225 = vsyncadd [#allocation3], 4294966272  ;;  %v170_v0 = vld [vmem:[#allocation2 + $0x38] sm:$0xff]  ;;  %v169_v1 = vld [vmem:[#allocation2 + $0x30] sm:$0xff]  ;;  %s231_s22 = smov [#allocation5]   ;;  %s121_s26 = sshll.u32 %s267_s3, 4  ;;  %s122_s26 = int_to_ptr.hbm [resolvable:$true] %s121_s26 }
   0x7   :  { %100 = vmatpush.bf16.msra.mxu0 %v170_v0  ;;  %v168_v2 = vld [vmem:[#allocation2 + $0x28] sm:$0xff]  ;;  %v167_v3 = vld [vmem:[#allocation2 + $0x20] sm:$0xff]  ;;  %v166_v4 = vld [vmem:[#allocation2 + $0x18] sm:$0xff]  ;;  %s119_s23 = sshll.u32 %s231_s22, 4  ;;  %s120_s23 = int_to_ptr.vmem [resolvable:$true] %s119_s23 }
   0x8   :  { %v165_v5 = vld [vmem:[#allocation2 + $0x10] sm:$0xff]  ;;  %v164_v6 = vld [vmem:[#allocation2 + $0x8] sm:$0xff]  ;;  %v163_v7 = vld [vmem:[#allocation2] sm:$0xff] }
   0x9   :  { %v31_v8 = vld [vmem:[%s264_s0] sm:$0xf] }
   0xa   :  { %v175_v9 = vld [vmem:[%s266_s2] ss:$0 sm:$0xff] }
   0xb   :  { %101 = vmatpush.bf16.msra.mxu0 %v169_v1 }
   0xf   :  { %102 = vmatpush.bf16.msra.mxu0 %v168_v2 }
  0x13   :  { %103 = vmatpush.bf16.msra.mxu0 %v167_v3 }
  0x17   :  { %104 = vmatpush.bf16.msra.mxu0 %v166_v4 }
  0x1b   :  { %105 = vmatpush.bf16.msra.mxu0 %v165_v5 }
  0x1f   :  { %106 = vmatpush.bf16.msra.mxu0 %v164_v6 }
  0x23   :  { %107 = vmatpush.bf16.msra.mxu0 %v163_v7 }
  0x26   :  { %108 = vmatmul.bf16.vlgmr.msra.gmra.mxu0 %v31_v8 }
  0xa3   :  { %v109_v10 = vpop.f32.mrf.mxu0 }
  0xa4   :  { %v110_v11 = vadd.f32 %v175_v9, %v109_v10 }
  0xa6   :  { %113 = vst [vmem:[#allocation5] sm:$0xff] %v110_v11 }
  0xa7   :  { %124 = dma.vmem_to_hbm [thread:$0]  %s120_s23, 128, %s122_s26, [#allocation4]  }
  0xab   :  { %v111_v12 = vpop.f32.mrf.mxu0 }
  0xac   :  { %226 = dma.done.wait [#allocation4], 128  }
  0xad   :  { %227 = vsyncadd [#allocation4], 4294967168 }
  0xae   :  { %129 = vsyncpa [#allocation3], 1 }
  0xaf   :  { %130 = vsyncpa [#allocation4], 1 }

</bundles_post_ra>
